<compile_context>
chip_gen: v7x
topology: tpu7x:2x2x1
jax: 0.10.0
libtpu: 0.0.40
codegen_flags: <defaults>
</compile_context>

<pallas_src>
import functools

import jax
import jax.numpy as jnp
from jax.experimental import pallas as pl
from jax.experimental.pallas import tpu as pltpu

LANE = 128          # pad feature / hidden / class dims to a full lane width
BN_EPS = 1e-5

_VMEM = pl.BlockSpec(memory_space=pltpu.MemorySpace.VMEM)


def _round_up(v, m):
    return ((v + m - 1) // m) * m


# ----------------------------------------------------------------------------
# Fused kernel: L x (GINConv MLP + BatchNorm + ReLU) + both classifier heads.
# ----------------------------------------------------------------------------
def fused_gin_kernel(a_ref, x_ref, w1_ref, b1_ref, w2_ref, b2_ref,
                     gamma_ref, beta_ref, wc_ref, bc_ref, out_ref,
                     *, n_valid, num_layers):
    n_pad = a_ref.shape[0]
    inv_n = 1.0 / float(n_valid)

    # Valid-node row mask: padded rows must never contaminate BN statistics.
    row_ids = jax.lax.broadcasted_iota(jnp.int32, (n_pad, 1), 0)
    mask = (row_ids < n_valid).astype(jnp.float32)

    a = a_ref[...]                      # (n_pad, n_pad) bf16, resident all layers
    h = x_ref[...]                      # (n_pad, LANE)  f32

    for l in range(num_layers):         # static, unrolled layer loop
        # GINConv (eps=0): z = x + sum_{j -> i} x_j  ==  x + A @ x
        agg = jnp.dot(a, h.astype(jnp.bfloat16),
                      preferred_element_type=jnp.float32)
        z = h + agg                                             # residual add in f32

        # MLP: Linear -> ReLU -> Linear   (bf16 MXU operands, f32 accumulate)
        t = jnp.dot(z.astype(jnp.bfloat16), w1_ref[l],
                    preferred_element_type=jnp.float32) + b1_ref[l]
        t = jnp.maximum(t, 0.0)
        t = jnp.dot(t.astype(jnp.bfloat16), w2_ref[l],
                    preferred_element_type=jnp.float32) + b2_ref[l]

        # BatchNorm1d (training mode, biased variance) -- one-pass masked stats.
        tm = t * mask
        s = jnp.sum(tm, axis=0, keepdims=True)
        ssq = jnp.sum(tm * tm, axis=0, keepdims=True)
        mean = s * inv_n
        var = jnp.maximum(ssq * inv_n - mean * mean, 0.0)
        t = (t - mean) * jax.lax.rsqrt(var + BN_EPS)
        t = t * gamma_ref[l] + beta_ref[l]

        # ReLU (F.dropout with p=0.0 is identity); re-zero padded rows.
        h = jnp.maximum(t, 0.0) * mask

    # Both classifier heads as one lane-dense matmul (only fc2 is used).
    out_ref[...] = jnp.dot(h.astype(jnp.bfloat16), wc_ref[...],
                           preferred_element_type=jnp.float32) + bc_ref[...]


# ----------------------------------------------------------------------------
# Forward wrapper (single fused pallas_call, whole arrays resident in VMEM)
# ----------------------------------------------------------------------------
@functools.partial(jax.jit,
                   static_argnames=("num_nodes", "num_classes_1",
                                    "num_classes_2"))
def cross_tu_gin_forward(params, x, edge_index, num_nodes,
                         num_classes_1, num_classes_2):
    n = num_nodes
    n_pad = _round_up(max(n, 16), 16)
    f_in = x.shape[1]

    # Dense adjacency A[dst, src] += 1 built in XLA.
    # TODO(synk): for large / genuinely sparse graphs replace the dense N x N
    # adjacency with a row-tiled grid + scalar-prefetched block mask (or a
    # gather/segment-sum path) instead of a dense A @ x; the fully fused,
    # A-resident version below assumes N is small enough for VMEM.
    a = jnp.zeros((n_pad, n_pad), jnp.float32)
    a = a.at[edge_index[1], edge_index[0]].add(1.0)
    a = a.astype(jnp.bfloat16)   # edge multiplicities are small ints -> exact

    x_p = jnp.zeros((n_pad, LANE), jnp.float32).at[:n, :f_in].set(x)

    num_layers = int(params["w1"].shape[0])
    kernel = functools.partial(fused_gin_kernel, n_valid=n,
                               num_layers=num_layers)

    out = pl.pallas_call(
        kernel,
        out_shape=jax.ShapeDtypeStruct((n_pad, LANE), jnp.float32),
        in_specs=[_VMEM] * 10,
        out_specs=_VMEM,
    )(a, x_p,
      params["w1"].astype(jnp.bfloat16), params["b1"],
      params["w2"].astype(jnp.bfloat16), params["b2"],
      params["gamma"], params["beta"],
      params["wc"].astype(jnp.bfloat16), params["bc"])

    out1 = out[:n, :num_classes_1]
    out2 = out[:n, num_classes_1:num_classes_1 + num_classes_2]
    return out1, out2


# ----------------------------------------------------------------------------
# Parameter construction (deterministic, PyTorch-Linear-style uniform init),
# zero-padded to LANE=128 and stacked over layers.
# ----------------------------------------------------------------------------
def _linear_params(key, fan_in, fan_out):
    bound = 1.0 / jnp.sqrt(float(fan_in))
    k_w, k_b = jax.random.split(key)
    # Stored already transposed: (fan_in, fan_out) so the kernel does x @ W.
    w = jax.random.uniform(k_w, (fan_in, fan_out), jnp.float32, -bound, bound)
    b = jax.random.uniform(k_b, (fan_out,), jnp.float32, -bound, bound)
    return w, b


def _pad2(w, rows, cols):
    return jnp.zeros((rows, cols), jnp.float32).at[:w.shape[0], :w.shape[1]].set(w)


def _pad_row(v, cols):
    return jnp.zeros((1, cols), jnp.float32).at[0, :v.shape[0]].set(v)


def init_params(key, num_features, hidden_dim, num_classes_1, num_classes_2,
                num_layers):
    assert num_features <= LANE and hidden_dim <= LANE
    assert num_classes_1 + num_classes_2 <= LANE
    num_convs = 1 + (num_layers - 2)            # matches CGIN.__init__ (=> 4 for 5)

    w1s, b1s, w2s, b2s, gammas, betas = [], [], [], [], [], []
    for i in range(num_convs):
        fin = num_features if i == 0 else hidden_dim
        key, k1, k2 = jax.random.split(key, 3)
        w1, b1 = _linear_params(k1, fin, hidden_dim)
        w2, b2 = _linear_params(k2, hidden_dim, hidden_dim)
        w1s.append(_pad2(w1, LANE, LANE))
        b1s.append(_pad_row(b1, LANE))
        w2s.append(_pad2(w2, LANE, LANE))
        b2s.append(_pad_row(b2, LANE))
        gammas.append(_pad_row(jnp.ones((hidden_dim,), jnp.float32), LANE))
        betas.append(_pad_row(jnp.zeros((hidden_dim,), jnp.float32), LANE))

    # Classifier.forward only uses fc2 -> only fc2 parameters matter; both
    # heads are concatenated into one lane-dense (LANE, LANE) matmul.
    key, kc1, kc2 = jax.random.split(key, 3)
    wc1, bc1 = _linear_params(kc1, hidden_dim, num_classes_1)
    wc2, bc2 = _linear_params(kc2, hidden_dim, num_classes_2)
    wc = jnp.concatenate([wc1, wc2], axis=1)
    bc = jnp.concatenate([bc1, bc2], axis=0)

    # TODO(synk): CGIN.linear and Classifier.fc1 exist in __init__ but are never
    # used in forward; intentionally omitted.
    return {
        "w1": jnp.stack(w1s),          # (L, LANE, LANE)
        "b1": jnp.stack(b1s),          # (L, 1, LANE)
        "w2": jnp.stack(w2s),
        "b2": jnp.stack(b2s),
        "gamma": jnp.stack(gammas),
        "beta": jnp.stack(betas),
        "wc": _pad2(wc, LANE, LANE),   # (LANE, LANE)
        "bc": _pad_row(bc, LANE),      # (1, LANE)
    }


# ----------------------------------------------------------------------------
# Pure-JAX f32 reference (same math, no Pallas, no bf16) for sanity checking.
# ----------------------------------------------------------------------------
def reference_forward(params, x, edge_index, num_nodes,
                      num_classes_1, num_classes_2):
    n = num_nodes
    n_pad = _round_up(max(n, 16), 16)
    f_in = x.shape[1]
    a = jnp.zeros((n_pad, n_pad), jnp.float32)
    a = a.at[edge_index[1], edge_index[0]].add(1.0)
    h = jnp.zeros((n_pad, LANE), jnp.float32).at[:n, :f_in].set(x)
    mask = (jnp.arange(n_pad) < n).astype(jnp.float32)[:, None]
    for l in range(params["w1"].shape[0]):
        z = h + a @ h
        t = jnp.maximum(z @ params["w1"][l] + params["b1"][l], 0.0)
        t = t @ params["w2"][l] + params["b2"][l]
        tm = t * mask
        mean = jnp.sum(tm, axis=0, keepdims=True) / n
        var = jnp.maximum(jnp.sum(tm * tm, axis=0, keepdims=True) / n
                          - mean * mean, 0.0)
        t = (t - mean) * jax.lax.rsqrt(var + BN_EPS)
        t = t * params["gamma"][l] + params["beta"][l]
        h = jnp.maximum(t, 0.0) * mask
    out = h @ params["wc"] + params["bc"]
    return (out[:n, :num_classes_1],
            out[:n, num_classes_1:num_classes_1 + num_classes_2])


# ----------------------------------------------------------------------------
# Demo
# ----------------------------------------------------------------------------
if __name__ == "__main__":
    N = 16                  # nodes
    NUM_FEATURES = 8
    HIDDEN = 64             # PyTorch default hidden_dim
    NUM_CLASSES_1 = 2
    NUM_CLASSES_2 = 2
    NUM_LAYERS = 5

    key = jax.random.PRNGKey(0)
    key, k_x, k_p = jax.random.split(key, 3)

    # Node features
    x = jax.random.normal(k_x, (N, NUM_FEATURES), jnp.float32)

    # Deterministic bidirectional ring graph: edge_index shape (2, 2N)
    src = jnp.arange(N, dtype=jnp.int32)
    dst = (src + 1) % N
    edge_index = jnp.stack([jnp.concatenate([src, dst]),
                            jnp.concatenate([dst, src])], axis=0)

    params = init_params(k_p, NUM_FEATURES, HIDDEN,
                         NUM_CLASSES_1, NUM_CLASSES_2, NUM_LAYERS)

    out1, out2 = cross_tu_gin_forward(params, x, edge_index, N,
                                      NUM_CLASSES_1, NUM_CLASSES_2)
    jax.block_until_ready((out1, out2))

    assert out1.shape == (N, NUM_CLASSES_1) and out2.shape == (N, NUM_CLASSES_2)
    assert bool(jnp.all(jnp.isfinite(out1))) and bool(jnp.all(jnp.isfinite(out2)))

    # Sanity check vs. f32 reference (kernel uses bf16 MXU operands -> loose tol).
    r1, r2 = reference_forward(params, x, edge_index, N,
                               NUM_CLASSES_1, NUM_CLASSES_2)
    err = max(float(jnp.max(jnp.abs(out1 - r1))),
              float(jnp.max(jnp.abs(out2 - r2))))
    assert err < 0.25, f"mismatch vs reference: max abs err {err}"

    print("KERNEL_OK")
</pallas_src>

<mosaic_0001>
module attributes {stable_mosaic.version = 11 : i64} {
  func.func private @main(%arg0: i32) attributes {dimension_semantics = [#tpu.dimension_semantics<core_parallel>], iteration_bounds = array<i64: 2>, tpu.core_type = #tpu.core_type<sc_scalar_subcore>, window_params = []} {
    return
  }
}

module attributes {stable_mosaic.version = 11 : i64} {
  func.func private @main(%arg0: i32) attributes {dimension_semantics = [#tpu.dimension_semantics<core_parallel>], iteration_bounds = array<i64: 2>, tpu.core_type = #tpu.core_type<sc_scalar_subcore>, window_params = []} {
    return
  }
}

module attributes {stable_mosaic.version = 11 : i64} {
  func.func @fused_gin_kernel(%arg0: memref<16x16xbf16, #tpu.memory_space<vmem>>, %arg1: memref<16x128xf32, #tpu.memory_space<vmem>>, %arg2: memref<4x128x128xbf16, #tpu.memory_space<vmem>>, %arg3: memref<4x1x128xf32, #tpu.memory_space<vmem>>, %arg4: memref<4x128x128xbf16, #tpu.memory_space<vmem>>, %arg5: memref<4x1x128xf32, #tpu.memory_space<vmem>>, %arg6: memref<4x1x128xf32, #tpu.memory_space<vmem>>, %arg7: memref<4x1x128xf32, #tpu.memory_space<vmem>>, %arg8: memref<128x128xbf16, #tpu.memory_space<vmem>>, %arg9: memref<1x128xf32, #tpu.memory_space<vmem>>, %arg10: memref<16x128xf32, #tpu.memory_space<vmem>>) attributes {dimension_semantics = [], scalar_prefetch = 0 : i64, scratch_operands = 0 : i64, tpu.core_type = #tpu.core_type<tc>} {
    %0 = tpu.iota {dimensions = array<i32: 0>} : vector<16x1xi32>
    %c16_i32 = arith.constant 16 : i32
    %1 = vector.broadcast %c16_i32 : i32 to vector<16x1xi32>
    %2 = arith.cmpi slt, %0, %1 : vector<16x1xi32>
    %3 = arith.extui %2 : vector<16x1xi1> to vector<16x1xi32>
    %4 = arith.sitofp %3 : vector<16x1xi32> to vector<16x1xf32>
    %c0 = arith.constant 0 : index
    %c0_0 = arith.constant 0 : index
    %5 = vector.load %arg0[%c0, %c0_0] : memref<16x16xbf16, #tpu.memory_space<vmem>>, vector<16x16xbf16>
    %c0_1 = arith.constant 0 : index
    %c0_2 = arith.constant 0 : index
    %6 = vector.load %arg1[%c0_1, %c0_2] : memref<16x128xf32, #tpu.memory_space<vmem>>, vector<16x128xf32>
    %7 = arith.truncf %6 : vector<16x128xf32> to vector<16x128xbf16>
    %cst = arith.constant dense<0.000000e+00> : vector<16x128xf32>
    %8 = tpu.matmul %5, %7, %cst {dimension_numbers = #tpu.dot_dimension_numbers<[1], [0], [0], [1], [0, 0, 1, 1], [], []>} : vector<16x16xbf16>, vector<16x128xbf16>, vector<16x128xf32> -> vector<16x128xf32>
    %9 = arith.addf %6, %8 : vector<16x128xf32>
    %10 = arith.truncf %9 : vector<16x128xf32> to vector<16x128xbf16>
    %c0_3 = arith.constant 0 : index
    %c0_4 = arith.constant 0 : index
    %c0_5 = arith.constant 0 : index
    %11 = vector.load %arg2[%c0_3, %c0_4, %c0_5] : memref<4x128x128xbf16, #tpu.memory_space<vmem>>, vector<1x128x128xbf16>
    %12 = vector.shape_cast %11 : vector<1x128x128xbf16> to vector<128x128xbf16>
    %cst_6 = arith.constant dense<0.000000e+00> : vector<16x128xf32>
    %13 = tpu.matmul %10, %12, %cst_6 {dimension_numbers = #tpu.dot_dimension_numbers<[1], [0], [0], [1], [0, 0, 1, 1], [], []>} : vector<16x128xbf16>, vector<128x128xbf16>, vector<16x128xf32> -> vector<16x128xf32>
    %c0_7 = arith.constant 0 : index
    %c0_8 = arith.constant 0 : index
    %c0_9 = arith.constant 0 : index
    %14 = vector.load %arg3[%c0_7, %c0_8, %c0_9] : memref<4x1x128xf32, #tpu.memory_space<vmem>>, vector<1x1x128xf32>
    %15 = vector.shape_cast %14 : vector<1x1x128xf32> to vector<1x128xf32>
    %16 = vector.broadcast %15 : vector<1x128xf32> to vector<16x128xf32>
    %17 = arith.addf %13, %16 : vector<16x128xf32>
    %cst_10 = arith.constant 0.000000e+00 : f32
    %18 = vector.broadcast %cst_10 : f32 to vector<16x128xf32>
    %19 = arith.maximumf %17, %18 : vector<16x128xf32>
    %20 = arith.truncf %19 : vector<16x128xf32> to vector<16x128xbf16>
    %c0_11 = arith.constant 0 : index
    %c0_12 = arith.constant 0 : index
    %c0_13 = arith.constant 0 : index
    %21 = vector.load %arg4[%c0_11, %c0_12, %c0_13] : memref<4x128x128xbf16, #tpu.memory_space<vmem>>, vector<1x128x128xbf16>
    %22 = vector.shape_cast %21 : vector<1x128x128xbf16> to vector<128x128xbf16>
    %cst_14 = arith.constant dense<0.000000e+00> : vector<16x128xf32>
    %23 = tpu.matmul %20, %22, %cst_14 {dimension_numbers = #tpu.dot_dimension_numbers<[1], [0], [0], [1], [0, 0, 1, 1], [], []>} : vector<16x128xbf16>, vector<128x128xbf16>, vector<16x128xf32> -> vector<16x128xf32>
    %c0_15 = arith.constant 0 : index
    %c0_16 = arith.constant 0 : index
    %c0_17 = arith.constant 0 : index
    %24 = vector.load %arg5[%c0_15, %c0_16, %c0_17] : memref<4x1x128xf32, #tpu.memory_space<vmem>>, vector<1x1x128xf32>
    %25 = vector.shape_cast %24 : vector<1x1x128xf32> to vector<1x128xf32>
    %26 = vector.broadcast %25 : vector<1x128xf32> to vector<16x128xf32>
    %27 = arith.addf %23, %26 : vector<16x128xf32>
    %28 = vector.broadcast %4 : vector<16x1xf32> to vector<16x128xf32>
    %29 = arith.mulf %27, %28 : vector<16x128xf32>
    %cst_18 = arith.constant dense<0.000000e+00> : vector<128xf32>
    %30 = vector.multi_reduction <add>, %29, %cst_18 [0] : vector<16x128xf32> to vector<128xf32>
    %31 = vector.shape_cast %30 : vector<128xf32> to vector<1x128xf32>
    %32 = arith.mulf %29, %29 : vector<16x128xf32>
    %cst_19 = arith.constant dense<0.000000e+00> : vector<128xf32>
    %33 = vector.multi_reduction <add>, %32, %cst_19 [0] : vector<16x128xf32> to vector<128xf32>
    %34 = vector.shape_cast %33 : vector<128xf32> to vector<1x128xf32>
    %cst_20 = arith.constant 6.250000e-02 : f32
    %35 = vector.broadcast %cst_20 : f32 to vector<1x128xf32>
    %36 = arith.mulf %31, %35 : vector<1x128xf32>
    %cst_21 = arith.constant 6.250000e-02 : f32
    %37 = vector.broadcast %cst_21 : f32 to vector<1x128xf32>
    %38 = arith.mulf %34, %37 : vector<1x128xf32>
    %39 = arith.mulf %36, %36 : vector<1x128xf32>
    %40 = arith.subf %38, %39 : vector<1x128xf32>
    %cst_22 = arith.constant 0.000000e+00 : f32
    %41 = vector.broadcast %cst_22 : f32 to vector<1x128xf32>
    %42 = arith.maximumf %40, %41 : vector<1x128xf32>
    %43 = vector.broadcast %36 : vector<1x128xf32> to vector<16x128xf32>
    %44 = arith.subf %27, %43 : vector<16x128xf32>
    %cst_23 = arith.constant 9.99999974E-6 : f32
    %45 = vector.broadcast %cst_23 : f32 to vector<1x128xf32>
    %46 = arith.addf %42, %45 : vector<1x128xf32>
    %47 = math.rsqrt %46 : vector<1x128xf32>
    %48 = vector.broadcast %47 : vector<1x128xf32> to vector<16x128xf32>
    %49 = arith.mulf %44, %48 : vector<16x128xf32>
    %c0_24 = arith.constant 0 : index
    %c0_25 = arith.constant 0 : index
    %c0_26 = arith.constant 0 : index
    %50 = vector.load %arg6[%c0_24, %c0_25, %c0_26] : memref<4x1x128xf32, #tpu.memory_space<vmem>>, vector<1x1x128xf32>
    %51 = vector.shape_cast %50 : vector<1x1x128xf32> to vector<1x128xf32>
    %52 = vector.broadcast %51 : vector<1x128xf32> to vector<16x128xf32>
    %53 = arith.mulf %49, %52 : vector<16x128xf32>
    %c0_27 = arith.constant 0 : index
    %c0_28 = arith.constant 0 : index
    %c0_29 = arith.constant 0 : index
    %54 = vector.load %arg7[%c0_27, %c0_28, %c0_29] : memref<4x1x128xf32, #tpu.memory_space<vmem>>, vector<1x1x128xf32>
    %55 = vector.shape_cast %54 : vector<1x1x128xf32> to vector<1x128xf32>
    %56 = vector.broadcast %55 : vector<1x128xf32> to vector<16x128xf32>
    %57 = arith.addf %53, %56 : vector<16x128xf32>
    %cst_30 = arith.constant 0.000000e+00 : f32
    %58 = vector.broadcast %cst_30 : f32 to vector<16x128xf32>
    %59 = arith.maximumf %57, %58 : vector<16x128xf32>
    %60 = vector.broadcast %4 : vector<16x1xf32> to vector<16x128xf32>
    %61 = arith.mulf %59, %60 : vector<16x128xf32>
    %62 = arith.truncf %61 : vector<16x128xf32> to vector<16x128xbf16>
    %cst_31 = arith.constant dense<0.000000e+00> : vector<16x128xf32>
    %63 = tpu.matmul %5, %62, %cst_31 {dimension_numbers = #tpu.dot_dimension_numbers<[1], [0], [0], [1], [0, 0, 1, 1], [], []>} : vector<16x16xbf16>, vector<16x128xbf16>, vector<16x128xf32> -> vector<16x128xf32>
    %64 = arith.addf %61, %63 : vector<16x128xf32>
    %65 = arith.truncf %64 : vector<16x128xf32> to vector<16x128xbf16>
    %c1 = arith.constant 1 : index
    %c0_32 = arith.constant 0 : index
    %c0_33 = arith.constant 0 : index
    %66 = vector.load %arg2[%c1, %c0_32, %c0_33] : memref<4x128x128xbf16, #tpu.memory_space<vmem>>, vector<1x128x128xbf16>
    %67 = vector.shape_cast %66 : vector<1x128x128xbf16> to vector<128x128xbf16>
    %cst_34 = arith.constant dense<0.000000e+00> : vector<16x128xf32>
    %68 = tpu.matmul %65, %67, %cst_34 {dimension_numbers = #tpu.dot_dimension_numbers<[1], [0], [0], [1], [0, 0, 1, 1], [], []>} : vector<16x128xbf16>, vector<128x128xbf16>, vector<16x128xf32> -> vector<16x128xf32>
    %c1_35 = arith.constant 1 : index
    %c0_36 = arith.constant 0 : index
    %c0_37 = arith.constant 0 : index
    %69 = vector.load %arg3[%c1_35, %c0_36, %c0_37] : memref<4x1x128xf32, #tpu.memory_space<vmem>>, vector<1x1x128xf32>
    %70 = vector.shape_cast %69 : vector<1x1x128xf32> to vector<1x128xf32>
    %71 = vector.broadcast %70 : vector<1x128xf32> to vector<16x128xf32>
    %72 = arith.addf %68, %71 : vector<16x128xf32>
    %cst_38 = arith.constant 0.000000e+00 : f32
    %73 = vector.broadcast %cst_38 : f32 to vector<16x128xf32>
    %74 = arith.maximumf %72, %73 : vector<16x128xf32>
    %75 = arith.truncf %74 : vector<16x128xf32> to vector<16x128xbf16>
    %c1_39 = arith.constant 1 : index
    %c0_40 = arith.constant 0 : index
    %c0_41 = arith.constant 0 : index
    %76 = vector.load %arg4[%c1_39, %c0_40, %c0_41] : memref<4x128x128xbf16, #tpu.memory_space<vmem>>, vector<1x128x128xbf16>
    %77 = vector.shape_cast %76 : vector<1x128x128xbf16> to vector<128x128xbf16>
    %cst_42 = arith.constant dense<0.000000e+00> : vector<16x128xf32>
    %78 = tpu.matmul %75, %77, %cst_42 {dimension_numbers = #tpu.dot_dimension_numbers<[1], [0], [0], [1], [0, 0, 1, 1], [], []>} : vector<16x128xbf16>, vector<128x128xbf16>, vector<16x128xf32> -> vector<16x128xf32>
    %c1_43 = arith.constant 1 : index
    %c0_44 = arith.constant 0 : index
    %c0_45 = arith.constant 0 : index
    %79 = vector.load %arg5[%c1_43, %c0_44, %c0_45] : memref<4x1x128xf32, #tpu.memory_space<vmem>>, vector<1x1x128xf32>
    %80 = vector.shape_cast %79 : vector<1x1x128xf32> to vector<1x128xf32>
    %81 = vector.broadcast %80 : vector<1x128xf32> to vector<16x128xf32>
    %82 = arith.addf %78, %81 : vector<16x128xf32>
    %83 = vector.broadcast %4 : vector<16x1xf32> to vector<16x128xf32>
    %84 = arith.mulf %82, %83 : vector<16x128xf32>
    %cst_46 = arith.constant dense<0.000000e+00> : vector<128xf32>
    %85 = vector.multi_reduction <add>, %84, %cst_46 [0] : vector<16x128xf32> to vector<128xf32>
    %86 = vector.shape_cast %85 : vector<128xf32> to vector<1x128xf32>
    %87 = arith.mulf %84, %84 : vector<16x128xf32>
    %cst_47 = arith.constant dense<0.000000e+00> : vector<128xf32>
    %88 = vector.multi_reduction <add>, %87, %cst_47 [0] : vector<16x128xf32> to vector<128xf32>
    %89 = vector.shape_cast %88 : vector<128xf32> to vector<1x128xf32>
    %cst_48 = arith.constant 6.250000e-02 : f32
    %90 = vector.broadcast %cst_48 : f32 to vector<1x128xf32>
    %91 = arith.mulf %86, %90 : vector<1x128xf32>
    %cst_49 = arith.constant 6.250000e-02 : f32
    %92 = vector.broadcast %cst_49 : f32 to vector<1x128xf32>
    %93 = arith.mulf %89, %92 : vector<1x128xf32>
    %94 = arith.mulf %91, %91 : vector<1x128xf32>
    %95 = arith.subf %93, %94 : vector<1x128xf32>
    %cst_50 = arith.constant 0.000000e+00 : f32
    %96 = vector.broadcast %cst_50 : f32 to vector<1x128xf32>
    %97 = arith.maximumf %95, %96 : vector<1x128xf32>
    %98 = vector.broadcast %91 : vector<1x128xf32> to vector<16x128xf32>
    %99 = arith.subf %82, %98 : vector<16x128xf32>
    %cst_51 = arith.constant 9.99999974E-6 : f32
    %100 = vector.broadcast %cst_51 : f32 to vector<1x128xf32>
    %101 = arith.addf %97, %100 : vector<1x128xf32>
    %102 = math.rsqrt %101 : vector<1x128xf32>
    %103 = vector.broadcast %102 : vector<1x128xf32> to vector<16x128xf32>
    %104 = arith.mulf %99, %103 : vector<16x128xf32>
    %c1_52 = arith.constant 1 : index
    %c0_53 = arith.constant 0 : index
    %c0_54 = arith.constant 0 : index
    %105 = vector.load %arg6[%c1_52, %c0_53, %c0_54] : memref<4x1x128xf32, #tpu.memory_space<vmem>>, vector<1x1x128xf32>
    %106 = vector.shape_cast %105 : vector<1x1x128xf32> to vector<1x128xf32>
    %107 = vector.broadcast %106 : vector<1x128xf32> to vector<16x128xf32>
    %108 = arith.mulf %104, %107 : vector<16x128xf32>
    %c1_55 = arith.constant 1 : index
    %c0_56 = arith.constant 0 : index
    %c0_57 = arith.constant 0 : index
    %109 = vector.load %arg7[%c1_55, %c0_56, %c0_57] : memref<4x1x128xf32, #tpu.memory_space<vmem>>, vector<1x1x128xf32>
    %110 = vector.shape_cast %109 : vector<1x1x128xf32> to vector<1x128xf32>
    %111 = vector.broadcast %110 : vector<1x128xf32> to vector<16x128xf32>
    %112 = arith.addf %108, %111 : vector<16x128xf32>
    %cst_58 = arith.constant 0.000000e+00 : f32
    %113 = vector.broadcast %cst_58 : f32 to vector<16x128xf32>
    %114 = arith.maximumf %112, %113 : vector<16x128xf32>
    %115 = vector.broadcast %4 : vector<16x1xf32> to vector<16x128xf32>
    %116 = arith.mulf %114, %115 : vector<16x128xf32>
    %117 = arith.truncf %116 : vector<16x128xf32> to vector<16x128xbf16>
    %cst_59 = arith.constant dense<0.000000e+00> : vector<16x128xf32>
    %118 = tpu.matmul %5, %117, %cst_59 {dimension_numbers = #tpu.dot_dimension_numbers<[1], [0], [0], [1], [0, 0, 1, 1], [], []>} : vector<16x16xbf16>, vector<16x128xbf16>, vector<16x128xf32> -> vector<16x128xf32>
    %119 = arith.addf %116, %118 : vector<16x128xf32>
    %120 = arith.truncf %119 : vector<16x128xf32> to vector<16x128xbf16>
    %c2 = arith.constant 2 : index
    %c0_60 = arith.constant 0 : index
    %c0_61 = arith.constant 0 : index
    %121 = vector.load %arg2[%c2, %c0_60, %c0_61] : memref<4x128x128xbf16, #tpu.memory_space<vmem>>, vector<1x128x128xbf16>
    %122 = vector.shape_cast %121 : vector<1x128x128xbf16> to vector<128x128xbf16>
    %cst_62 = arith.constant dense<0.000000e+00> : vector<16x128xf32>
    %123 = tpu.matmul %120, %122, %cst_62 {dimension_numbers = #tpu.dot_dimension_numbers<[1], [0], [0], [1], [0, 0, 1, 1], [], []>} : vector<16x128xbf16>, vector<128x128xbf16>, vector<16x128xf32> -> vector<16x128xf32>
    %c2_63 = arith.constant 2 : index
    %c0_64 = arith.constant 0 : index
    %c0_65 = arith.constant 0 : index
    %124 = vector.load %arg3[%c2_63, %c0_64, %c0_65] : memref<4x1x128xf32, #tpu.memory_space<vmem>>, vector<1x1x128xf32>
    %125 = vector.shape_cast %124 : vector<1x1x128xf32> to vector<1x128xf32>
    %126 = vector.broadcast %125 : vector<1x128xf32> to vector<16x128xf32>
    %127 = arith.addf %123, %126 : vector<16x128xf32>
    %cst_66 = arith.constant 0.000000e+00 : f32
    %128 = vector.broadcast %cst_66 : f32 to vector<16x128xf32>
    %129 = arith.maximumf %127, %128 : vector<16x128xf32>
    %130 = arith.truncf %129 : vector<16x128xf32> to vector<16x128xbf16>
    %c2_67 = arith.constant 2 : index
    %c0_68 = arith.constant 0 : index
    %c0_69 = arith.constant 0 : index
    %131 = vector.load %arg4[%c2_67, %c0_68, %c0_69] : memref<4x128x128xbf16, #tpu.memory_space<vmem>>, vector<1x128x128xbf16>
    %132 = vector.shape_cast %131 : vector<1x128x128xbf16> to vector<128x128xbf16>
    %cst_70 = arith.constant dense<0.000000e+00> : vector<16x128xf32>
    %133 = tpu.matmul %130, %132, %cst_70 {dimension_numbers = #tpu.dot_dimension_numbers<[1], [0], [0], [1], [0, 0, 1, 1], [], []>} : vector<16x128xbf16>, vector<128x128xbf16>, vector<16x128xf32> -> vector<16x128xf32>
    %c2_71 = arith.constant 2 : index
    %c0_72 = arith.constant 0 : index
    %c0_73 = arith.constant 0 : index
    %134 = vector.load %arg5[%c2_71, %c0_72, %c0_73] : memref<4x1x128xf32, #tpu.memory_space<vmem>>, vector<1x1x128xf32>
    %135 = vector.shape_cast %134 : vector<1x1x128xf32> to vector<1x128xf32>
    %136 = vector.broadcast %135 : vector<1x128xf32> to vector<16x128xf32>
    %137 = arith.addf %133, %136 : vector<16x128xf32>
    %138 = vector.broadcast %4 : vector<16x1xf32> to vector<16x128xf32>
    %139 = arith.mulf %137, %138 : vector<16x128xf32>
    %cst_74 = arith.constant dense<0.000000e+00> : vector<128xf32>
    %140 = vector.multi_reduction <add>, %139, %cst_74 [0] : vector<16x128xf32> to vector<128xf32>
    %141 = vector.shape_cast %140 : vector<128xf32> to vector<1x128xf32>
    %142 = arith.mulf %139, %139 : vector<16x128xf32>
    %cst_75 = arith.constant dense<0.000000e+00> : vector<128xf32>
    %143 = vector.multi_reduction <add>, %142, %cst_75 [0] : vector<16x128xf32> to vector<128xf32>
    %144 = vector.shape_cast %143 : vector<128xf32> to vector<1x128xf32>
    %cst_76 = arith.constant 6.250000e-02 : f32
    %145 = vector.broadcast %cst_76 : f32 to vector<1x128xf32>
    %146 = arith.mulf %141, %145 : vector<1x128xf32>
    %cst_77 = arith.constant 6.250000e-02 : f32
    %147 = vector.broadcast %cst_77 : f32 to vector<1x128xf32>
    %148 = arith.mulf %144, %147 : vector<1x128xf32>
    %149 = arith.mulf %146, %146 : vector<1x128xf32>
    %150 = arith.subf %148, %149 : vector<1x128xf32>
    %cst_78 = arith.constant 0.000000e+00 : f32
    %151 = vector.broadcast %cst_78 : f32 to vector<1x128xf32>
    %152 = arith.maximumf %150, %151 : vector<1x128xf32>
    %153 = vector.broadcast %146 : vector<1x128xf32> to vector<16x128xf32>
    %154 = arith.subf %137, %153 : vector<16x128xf32>
    %cst_79 = arith.constant 9.99999974E-6 : f32
    %155 = vector.broadcast %cst_79 : f32 to vector<1x128xf32>
    %156 = arith.addf %152, %155 : vector<1x128xf32>
    %157 = math.rsqrt %156 : vector<1x128xf32>
    %158 = vector.broadcast %157 : vector<1x128xf32> to vector<16x128xf32>
    %159 = arith.mulf %154, %158 : vector<16x128xf32>
    %c2_80 = arith.constant 2 : index
    %c0_81 = arith.constant 0 : index
    %c0_82 = arith.constant 0 : index
    %160 = vector.load %arg6[%c2_80, %c0_81, %c0_82] : memref<4x1x128xf32, #tpu.memory_space<vmem>>, vector<1x1x128xf32>
    %161 = vector.shape_cast %160 : vector<1x1x128xf32> to vector<1x128xf32>
    %162 = vector.broadcast %161 : vector<1x128xf32> to vector<16x128xf32>
    %163 = arith.mulf %159, %162 : vector<16x128xf32>
    %c2_83 = arith.constant 2 : index
    %c0_84 = arith.constant 0 : index
    %c0_85 = arith.constant 0 : index
    %164 = vector.load %arg7[%c2_83, %c0_84, %c0_85] : memref<4x1x128xf32, #tpu.memory_space<vmem>>, vector<1x1x128xf32>
    %165 = vector.shape_cast %164 : vector<1x1x128xf32> to vector<1x128xf32>
    %166 = vector.broadcast %165 : vector<1x128xf32> to vector<16x128xf32>
    %167 = arith.addf %163, %166 : vector<16x128xf32>
    %cst_86 = arith.constant 0.000000e+00 : f32
    %168 = vector.broadcast %cst_86 : f32 to vector<16x128xf32>
    %169 = arith.maximumf %167, %168 : vector<16x128xf32>
    %170 = vector.broadcast %4 : vector<16x1xf32> to vector<16x128xf32>
    %171 = arith.mulf %169, %170 : vector<16x128xf32>
    %172 = arith.truncf %171 : vector<16x128xf32> to vector<16x128xbf16>
    %cst_87 = arith.constant dense<0.000000e+00> : vector<16x128xf32>
    %173 = tpu.matmul %5, %172, %cst_87 {dimension_numbers = #tpu.dot_dimension_numbers<[1], [0], [0], [1], [0, 0, 1, 1], [], []>} : vector<16x16xbf16>, vector<16x128xbf16>, vector<16x128xf32> -> vector<16x128xf32>
    %174 = arith.addf %171, %173 : vector<16x128xf32>
    %175 = arith.truncf %174 : vector<16x128xf32> to vector<16x128xbf16>
    %c3 = arith.constant 3 : index
    %c0_88 = arith.constant 0 : index
    %c0_89 = arith.constant 0 : index
    %176 = vector.load %arg2[%c3, %c0_88, %c0_89] : memref<4x128x128xbf16, #tpu.memory_space<vmem>>, vector<1x128x128xbf16>
    %177 = vector.shape_cast %176 : vector<1x128x128xbf16> to vector<128x128xbf16>
    %cst_90 = arith.constant dense<0.000000e+00> : vector<16x128xf32>
    %178 = tpu.matmul %175, %177, %cst_90 {dimension_numbers = #tpu.dot_dimension_numbers<[1], [0], [0], [1], [0, 0, 1, 1], [], []>} : vector<16x128xbf16>, vector<128x128xbf16>, vector<16x128xf32> -> vector<16x128xf32>
    %c3_91 = arith.constant 3 : index
    %c0_92 = arith.constant 0 : index
    %c0_93 = arith.constant 0 : index
    %179 = vector.load %arg3[%c3_91, %c0_92, %c0_93] : memref<4x1x128xf32, #tpu.memory_space<vmem>>, vector<1x1x128xf32>
    %180 = vector.shape_cast %179 : vector<1x1x128xf32> to vector<1x128xf32>
    %181 = vector.broadcast %180 : vector<1x128xf32> to vector<16x128xf32>
    %182 = arith.addf %178, %181 : vector<16x128xf32>
    %cst_94 = arith.constant 0.000000e+00 : f32
    %183 = vector.broadcast %cst_94 : f32 to vector<16x128xf32>
    %184 = arith.maximumf %182, %183 : vector<16x128xf32>
    %185 = arith.truncf %184 : vector<16x128xf32> to vector<16x128xbf16>
    %c3_95 = arith.constant 3 : index
    %c0_96 = arith.constant 0 : index
    %c0_97 = arith.constant 0 : index
    %186 = vector.load %arg4[%c3_95, %c0_96, %c0_97] : memref<4x128x128xbf16, #tpu.memory_space<vmem>>, vector<1x128x128xbf16>
    %187 = vector.shape_cast %186 : vector<1x128x128xbf16> to vector<128x128xbf16>
    %cst_98 = arith.constant dense<0.000000e+00> : vector<16x128xf32>
    %188 = tpu.matmul %185, %187, %cst_98 {dimension_numbers = #tpu.dot_dimension_numbers<[1], [0], [0], [1], [0, 0, 1, 1], [], []>} : vector<16x128xbf16>, vector<128x128xbf16>, vector<16x128xf32> -> vector<16x128xf32>
    %c3_99 = arith.constant 3 : index
    %c0_100 = arith.constant 0 : index
    %c0_101 = arith.constant 0 : index
    %189 = vector.load %arg5[%c3_99, %c0_100, %c0_101] : memref<4x1x128xf32, #tpu.memory_space<vmem>>, vector<1x1x128xf32>
    %190 = vector.shape_cast %189 : vector<1x1x128xf32> to vector<1x128xf32>
    %191 = vector.broadcast %190 : vector<1x128xf32> to vector<16x128xf32>
    %192 = arith.addf %188, %191 : vector<16x128xf32>
    %193 = vector.broadcast %4 : vector<16x1xf32> to vector<16x128xf32>
    %194 = arith.mulf %192, %193 : vector<16x128xf32>
    %cst_102 = arith.constant dense<0.000000e+00> : vector<128xf32>
    %195 = vector.multi_reduction <add>, %194, %cst_102 [0] : vector<16x128xf32> to vector<128xf32>
    %196 = vector.shape_cast %195 : vector<128xf32> to vector<1x128xf32>
    %197 = arith.mulf %194, %194 : vector<16x128xf32>
    %cst_103 = arith.constant dense<0.000000e+00> : vector<128xf32>
    %198 = vector.multi_reduction <add>, %197, %cst_103 [0] : vector<16x128xf32> to vector<128xf32>
    %199 = vector.shape_cast %198 : vector<128xf32> to vector<1x128xf32>
    %cst_104 = arith.constant 6.250000e-02 : f32
    %200 = vector.broadcast %cst_104 : f32 to vector<1x128xf32>
    %201 = arith.mulf %196, %200 : vector<1x128xf32>
    %cst_105 = arith.constant 6.250000e-02 : f32
    %202 = vector.broadcast %cst_105 : f32 to vector<1x128xf32>
    %203 = arith.mulf %199, %202 : vector<1x128xf32>
    %204 = arith.mulf %201, %201 : vector<1x128xf32>
    %205 = arith.subf %203, %204 : vector<1x128xf32>
    %cst_106 = arith.constant 0.000000e+00 : f32
    %206 = vector.broadcast %cst_106 : f32 to vector<1x128xf32>
    %207 = arith.maximumf %205, %206 : vector<1x128xf32>
    %208 = vector.broadcast %201 : vector<1x128xf32> to vector<16x128xf32>
    %209 = arith.subf %192, %208 : vector<16x128xf32>
    %cst_107 = arith.constant 9.99999974E-6 : f32
    %210 = vector.broadcast %cst_107 : f32 to vector<1x128xf32>
    %211 = arith.addf %207, %210 : vector<1x128xf32>
    %212 = math.rsqrt %211 : vector<1x128xf32>
    %213 = vector.broadcast %212 : vector<1x128xf32> to vector<16x128xf32>
    %214 = arith.mulf %209, %213 : vector<16x128xf32>
    %c3_108 = arith.constant 3 : index
    %c0_109 = arith.constant 0 : index
    %c0_110 = arith.constant 0 : index
    %215 = vector.load %arg6[%c3_108, %c0_109, %c0_110] : memref<4x1x128xf32, #tpu.memory_space<vmem>>, vector<1x1x128xf32>
    %216 = vector.shape_cast %215 : vector<1x1x128xf32> to vector<1x128xf32>
    %217 = vector.broadcast %216 : vector<1x128xf32> to vector<16x128xf32>
    %218 = arith.mulf %214, %217 : vector<16x128xf32>
    %c3_111 = arith.constant 3 : index
    %c0_112 = arith.constant 0 : index
    %c0_113 = arith.constant 0 : index
    %219 = vector.load %arg7[%c3_111, %c0_112, %c0_113] : memref<4x1x128xf32, #tpu.memory_space<vmem>>, vector<1x1x128xf32>
    %220 = vector.shape_cast %219 : vector<1x1x128xf32> to vector<1x128xf32>
    %221 = vector.broadcast %220 : vector<1x128xf32> to vector<16x128xf32>
    %222 = arith.addf %218, %221 : vector<16x128xf32>
    %cst_114 = arith.constant 0.000000e+00 : f32
    %223 = vector.broadcast %cst_114 : f32 to vector<16x128xf32>
    %224 = arith.maximumf %222, %223 : vector<16x128xf32>
    %225 = vector.broadcast %4 : vector<16x1xf32> to vector<16x128xf32>
    %226 = arith.mulf %224, %225 : vector<16x128xf32>
    %227 = arith.truncf %226 : vector<16x128xf32> to vector<16x128xbf16>
    %c0_115 = arith.constant 0 : index
    %c0_116 = arith.constant 0 : index
    %228 = vector.load %arg8[%c0_115, %c0_116] : memref<128x128xbf16, #tpu.memory_space<vmem>>, vector<128x128xbf16>
    %cst_117 = arith.constant dense<0.000000e+00> : vector<16x128xf32>
    %229 = tpu.matmul %227, %228, %cst_117 {dimension_numbers = #tpu.dot_dimension_numbers<[1], [0], [0], [1], [0, 0, 1, 1], [], []>} : vector<16x128xbf16>, vector<128x128xbf16>, vector<16x128xf32> -> vector<16x128xf32>
    %c0_118 = arith.constant 0 : index
    %c0_119 = arith.constant 0 : index
    %230 = vector.load %arg9[%c0_118, %c0_119] : memref<1x128xf32, #tpu.memory_space<vmem>>, vector<1x128xf32>
    %231 = vector.broadcast %230 : vector<1x128xf32> to vector<16x128xf32>
    %232 = arith.addf %229, %231 : vector<16x128xf32>
    %c0_120 = arith.constant 0 : index
    %c0_121 = arith.constant 0 : index
    %233 = vector.load %arg10[%c0_120, %c0_121] : memref<16x128xf32, #tpu.memory_space<vmem>>, vector<16x128xf32>
    tpu.vector_store %arg10[%c0_120, %c0_121], %232 {strides = array<i32>} : memref<16x128xf32, #tpu.memory_space<vmem>>, vector<16x128xf32>,
    return
  }
}

</mosaic_0001>

<bundles_post_ra>
// kernel: cross_tu_gin_forward.1
= control target key start
LH: loop header
LB: loop body
LE: loop exit
PB: predicated region body
PF: predicated region fallthrough
CT: control target
= control target key end

     0   :  { %v2065_v0 = vmov 0.0   ;;  %vm2066_vm0 = vmmov 0   ;;  %vm55_vm1 = vcmask 130048   ;;  %s2516_s1 = inlined_call_operand.vmem [shape: f32[16,128], index: 1, kind: input, shape index: {}]   ;;  %s2517_s0 = inlined_call_operand.vmem [shape: bf16[16,16], index: 0, kind: input, shape index: {}]   ;;  %s2518_s2 = inlined_call_operand.vmem [shape: bf16[4,128,128], index: 2, kind: input, shape index: {}]   ;;  %s2519_s4 = inlined_call_operand.vmem [shape: bf16[4,128,128], index: 4, kind: input, shape index: {}]   ;;  %s2520_s3 = inlined_call_operand.vmem [shape: f32[4,1,128], index: 3, kind: input, shape index: {}]   ;;  %s2521_s5 = inlined_call_operand.vmem [shape: f32[4,1,128], index: 5, kind: input, shape index: {}]   ;;  %s2522_s6 = inlined_call_operand.vmem [shape: f32[4,1,128], index: 6, kind: input, shape index: {}]   ;;  %s2523_s7 = inlined_call_operand.vmem [shape: f32[4,1,128], index: 7, kind: input, shape index: {}]   ;;  %s2524_s8 = inlined_call_operand.vmem [shape: bf16[128,128], index: 8, kind: input, shape index: {}]   ;;  %s2525_s9 = inlined_call_operand.vmem [shape: f32[1,128], index: 9, kind: input, shape index: {}]   ;;  %s2526_s10 = inlined_call_operand.vmem [shape: f32[16,128], index: 10, kind: output, shape index: {}]  }
   0x1   :  { %1778 = vmatprep.subr.bf16.mxu1 %v2065_v0  ;;  %v47_v1 = vld [vmem:[%s2516_s1] sm:$0xff]  ;;  %v48_v2 = vld [vmem:[%s2516_s1 + $0x8] sm:$0xff]  ;;  %1780 = vmatprep.mubr.msk.bf16.mxu1 %vm2066_vm0, %v2065_v0  ;;  %v1987_v7 = vld [vmem:[%s2518_s2 + $0x10] sm:$0xff]  }
   0x2   :  { %v49_v3 = vpack.c.bf16 %v48_v2, %v47_v1  ;;  %1804 = vmatprep.subr.bf16.mxu0 %v2065_v0  ;;  %1820 = vmatprep.mubr.msk.bf16.mxu0 %vm2066_vm0, %v2065_v0  ;;  %v2137_v4 = vld [vmem:[%s2517_s0] sm:$0xff]   ;;  %v1986_v6 = vld [vmem:[%s2518_s2 + $0x8] sm:$0xff]   ;;  %v1988_v8 = vld [vmem:[%s2518_s2 + $0x18] sm:$0xff]  }
   0x3   :  { %v1985_v5 = vld [vmem:[%s2518_s2] sm:$0xff]   ;;  %v1990_v10 = vld [vmem:[%s2518_s2 + $0x28] sm:$0xff]   ;;  %v1991_v11 = vld [vmem:[%s2518_s2 + $0x30] sm:$0xff]  }
   0x4   :  { %1779 = vmatpush3.bf16.msra.mxu1 %v49_v3  ;;  %v1989_v9 = vld [vmem:[%s2518_s2 + $0x20] sm:$0xff]   ;;  %v1992_v12 = vld [vmem:[%s2518_s2 + $0x38] sm:$0xff]   ;;  %v1994_v14 = vld [vmem:[%s2519_s4 + $0x8] sm:$0xff]  }
   0x5   :  { %1784 = vmatprep.subr.bf16.mxu1 %v2065_v0  ;;  %v1993_v13 = vld [vmem:[%s2519_s4] sm:$0xff]   ;;  %v1995_v15 = vld [vmem:[%s2519_s4 + $0x10] sm:$0xff]   ;;  %v1996_v16 = vld [vmem:[%s2519_s4 + $0x18] sm:$0xff]  }
   0x6   :  { %1805 = vmatpush3.bf16.msra.mxu0 %v1993_v13  ;;  %v1997_v17 = vld [vmem:[%s2519_s4 + $0x20] sm:$0xff]   ;;  %v1998_v18 = vld [vmem:[%s2519_s4 + $0x28] sm:$0xff]   ;;  %v1999_v26 = vld [vmem:[%s2519_s4 + $0x30] sm:$0xff]  }
   0x7   :  { %1781 = vmatmul.mubr.msk.bf16.vlgmr.msra.gmra.mrb[0].mxu1 %vm55_vm1, %v2137_v4  ;;  %1806 = vmatprep.subr.bf16.mxu0 %v2065_v0  ;;  %v2000_v27 = vld [vmem:[%s2519_s4 + $0x38] sm:$0xff]   ;;  %v1489_v28 = vld [vmem:[%s2520_s3] ss:$0 sm:$0xff]  ;;  %v2002_v39 = vld [vmem:[%s2518_s2 + $0x48] sm:$0xff]  }
   0x8   :  { %1785 = vmatpush3.bf16.msra.mxu1 %v1985_v5  ;;  %1800 = vmatprep.mubr.msk.bf16.mxu1 %vm2066_vm0, %v2065_v0  ;;  %v2001_v38 = vld [vmem:[%s2518_s2 + $0x40] sm:$0xff]   ;;  %v2003_v40 = vld [vmem:[%s2518_s2 + $0x50] sm:$0xff]   ;;  %v2004_v41 = vld [vmem:[%s2518_s2 + $0x58] sm:$0xff]  }
   0x9   :  { %1786 = vmatprep.subr.bf16.mxu1 %v2065_v0  ;;  %v2005_v42 = vld [vmem:[%s2518_s2 + $0x60] sm:$0xff]   ;;  %v2006_v43 = vld [vmem:[%s2518_s2 + $0x68] sm:$0xff]  }
   0xa   :  { %1807 = vmatpush3.bf16.msra.mxu0 %v1994_v14  ;;  %v1498_v44 = vld [vmem:[%s2521_s5] ss:$0 sm:$0xff] }
   0xb   :  { %1808 = vmatprep.subr.bf16.mxu0 %v2065_v0  ;;  %v1507_v14 = vld [vmem:[%s2522_s6] ss:$0 sm:$0xff] }
   0xc   :  { %1787 = vmatpush3.bf16.msra.mxu1 %v1986_v6 }
   0xd   :  { %1788 = vmatprep.subr.bf16.mxu1 %v2065_v0 }
   0xe   :  { %1809 = vmatpush3.bf16.msra.mxu0 %v1995_v15 }
   0xf   :  { %1810 = vmatprep.subr.bf16.mxu0 %v2065_v0 }
  0x10   :  { %1789 = vmatpush3.bf16.msra.mxu1 %v1987_v7 }
  0x11   :  { %1790 = vmatprep.subr.bf16.mxu1 %v2065_v0 }
  0x12   :  { %1811 = vmatpush3.bf16.msra.mxu0 %v1996_v16 }
  0x13   :  { %1812 = vmatprep.subr.bf16.mxu0 %v2065_v0 }
  0x14   :  { %1791 = vmatpush3.bf16.msra.mxu1 %v1988_v8 }
  0x15   :  { %1792 = vmatprep.subr.bf16.mxu1 %v2065_v0 }
  0x16   :  { %1813 = vmatpush3.bf16.msra.mxu0 %v1997_v17  ;;  %v1508_v17 = vld [vmem:[%s2523_s7] ss:$0 sm:$0xff] }
  0x17   :  { %1814 = vmatprep.subr.bf16.mxu0 %v2065_v0 }
  0x18   :  { %1793 = vmatpush3.bf16.msra.mxu1 %v1989_v9 }
  0x19   :  { %1794 = vmatprep.subr.bf16.mxu1 %v2065_v0 }
  0x1a   :  { %1815 = vmatpush3.bf16.msra.mxu0 %v1998_v18 }
  0x1b   :  { %1816 = vmatprep.subr.bf16.mxu0 %v2065_v0 }
  0x1c   :  { %1795 = vmatpush3.bf16.msra.mxu1 %v1990_v10 }
  0x1d   :  { %1796 = vmatprep.subr.bf16.mxu1 %v2065_v0 }
  0x1e   :  { %1817 = vmatpush3.bf16.msra.mxu0 %v1999_v26  ;;  %v2008_v26 = vld [vmem:[%s2518_s2 + $0x78] sm:$0xff]  }
  0x1f   :  { %1818 = vmatprep.subr.bf16.mxu0 %v2065_v0 }
  0x20   :  { %1797 = vmatpush3.bf16.msra.mxu1 %v1991_v11 }
  0x21   :  { %1798 = vmatprep.subr.bf16.mxu1 %v2065_v0 }
  0x22   :  { %1819 = vmatpush3.bf16.msra.mxu0 %v2000_v27  ;;  %v2009_v27 = vld [vmem:[%s2519_s4 + $0x40] sm:$0xff]  }
  0x23   :  { %1830 = vmatprep.subr.bf16.mxu0 %v2065_v0 }
  0x24   :  { %1799 = vmatpush3.bf16.msra.mxu1 %v1992_v12 }
  0x25   :  { %1824 = vmatprep.subr.bf16.mxu1 %v2065_v0 }
  0xda   :  { %v93_v19 = vpop.f32.mrb[0].mxu1 }
  0xdb   :  { %v1782_v20 = vpop.f32.mrb[1].mxu1  ;;  %v100_v22 = vadd.f32 %v93_v19, %v47_v1 }
  0xdc   :  { %v96_v21 = vpop.f32.mrb[2].mxu1 }
  0xdd   :  { %v101_v23 = vadd.f32 %v96_v21, %v48_v2  ;;  %v1783_v24 = vpop.f32.mrb[3].mxu1 }
  0xdf   :  { %v102_v25 = vpack.c.bf16 %v101_v23, %v100_v22 }
  0xe1   :  { %1801 = vmatmul.mubr.bf16.vlgmr.msra.gmra.mrb[4].mxu1 %v102_v25  ;;  %v2007_v25 = vld [vmem:[%s2518_s2 + $0x70] sm:$0xff]  }
  0xe2   :  { %1826 = vmatprep.mubr.msk.bf16.mxu1 %vm2066_vm0, %v2065_v0 }
 0x1b4   :  { %v208_v29 = vpop.f32.mrb[4].mxu1 }
 0x1b5   :  { %v209_v30 = vadd.f32 %v1489_v28, %v208_v29  ;;  %v1802_v31 = vpop.f32.mrb[5].mxu1  ;;  %v2011_v29 = vld [vmem:[%s2519_s4 + $0x50] sm:$0xff]  }
 0x1b6   :  { %v211_v32 = vpop.f32.mrb[6].mxu1  ;;  %v2013_v31 = vld [vmem:[%s2519_s4 + $0x60] sm:$0xff]  }
 0x1b7   :  { %v212_v33 = vadd.f32 %v1489_v28, %v211_v32  ;;  %v1803_v34 = vpop.f32.mrb[7].mxu1  ;;  %v215_v35 = vmax.f32 %v209_v30, 0.0  ;;  %v2010_v28 = vld [vmem:[%s2519_s4 + $0x48] sm:$0xff]   ;;  %v2012_v30 = vld [vmem:[%s2519_s4 + $0x58] sm:$0xff]  }
 0x1b8   :  { %v2014_v32 = vld [vmem:[%s2519_s4 + $0x68] sm:$0xff]  }
 0x1b9   :  { %v216_v36 = vmax.f32 %v212_v33, 0.0 }
 0x1bb   :  { %v217_v37 = vpack.c.bf16 %v216_v36, %v215_v35 }
 0x1bd   :  { %1821 = vmatmul.mubr.bf16.vlgmr.msra.gmra.mrb[0].mxu0 %v217_v37 }
 0x1be   :  { %1846 = vmatprep.mubr.msk.bf16.mxu0 %vm2066_vm0, %v2065_v0  ;;  %1831 = vmatpush3.bf16.msra.mxu0 %v2001_v38 }
 0x1bf   :  { %1832 = vmatprep.subr.bf16.mxu0 %v2065_v0 }
 0x1c2   :  { %1833 = vmatpush3.bf16.msra.mxu0 %v2002_v39 }
 0x1c3   :  { %1834 = vmatprep.subr.bf16.mxu0 %v2065_v0 }
 0x1c6   :  { %1835 = vmatpush3.bf16.msra.mxu0 %v2003_v40  ;;  %v2015_v40 = vld [vmem:[%s2519_s4 + $0x70] sm:$0xff]  }
 0x1c7   :  { %1836 = vmatprep.subr.bf16.mxu0 %v2065_v0 }
 0x1ca   :  { %1837 = vmatpush3.bf16.msra.mxu0 %v2004_v41  ;;  %v2016_v41 = vld [vmem:[%s2519_s4 + $0x78] sm:$0xff]  }
 0x1cb   :  { %1838 = vmatprep.subr.bf16.mxu0 %v2065_v0 }
 0x1ce   :  { %1839 = vmatpush3.bf16.msra.mxu0 %v2005_v42  ;;  %v1527_v42 = vld [vmem:[%s2520_s3 + $0x1] ss:$0 sm:$0xff] }
 0x1cf   :  { %1840 = vmatprep.subr.bf16.mxu0 %v2065_v0 }
 0x1d2   :  { %1841 = vmatpush3.bf16.msra.mxu0 %v2006_v43 }
 0x1d3   :  { %1842 = vmatprep.subr.bf16.mxu0 %v2065_v0 }
 0x1d6   :  { %1843 = vmatpush3.bf16.msra.mxu0 %v2007_v25  ;;  %v1565_v25 = vld [vmem:[%s2523_s7 + $0x1] ss:$0 sm:$0xff] }
 0x1d7   :  { %1844 = vmatprep.subr.bf16.mxu0 %v2065_v0 }
 0x1da   :  { %1845 = vmatpush3.bf16.msra.mxu0 %v2008_v26 }
 0x1db   :  { %1896 = vmatprep.subr.bf16.mxu0 %v2065_v0 }
 0x290   :  { %v323_v45 = vpop.f32.mrb[0].mxu0 }
 0x291   :  { %v324_v46 = vadd.f32 %v1498_v44, %v323_v45  ;;  %v1822_v47 = vpop.f32.mrb[1].mxu0 }
 0x292   :  { %v326_v48 = vpop.f32.mrb[2].mxu0 }
 0x293   :  { %v327_v49 = vadd.f32 %v1498_v44, %v326_v48  ;;  %v1823_v50 = vpop.f32.mrb[3].mxu0  ;;  %v339_v51 = vmul.f32 %v324_v46, %v324_v46 }
 0x295   :  { %v332_v52 = vadd.f32 %v327_v49, %v324_v46  ;;  %v340_v53 = vmul.f32 %v327_v49, %v327_v49 }
 0x297   :  { %v333_v54 = vrot.slane %v332_v52, 4  ;;  %v341_v55 = vadd.f32 %v340_v53, %v339_v51 }
 0x299   :  { %v334_v56 = vadd.f32 %v333_v54, %v332_v52  ;;  %v342_v57 = vrot.slane %v341_v55, 4  ;;  %v1553_v52 = vld [vmem:[%s2521_s5 + $0x1] ss:$0 sm:$0xff] }
 0x29b   :  { %v335_v58 = vrot.slane %v334_v56, 2  ;;  %v343_v59 = vadd.f32 %v342_v57, %v341_v55 }
 0x29d   :  { %v336_v60 = vadd.f32 %v335_v58, %v334_v56  ;;  %v344_v61 = vrot.slane %v343_v59, 2 }
 0x29f   :  { %v337_v62 = vrot.slane %v336_v60, 1  ;;  %v345_v63 = vadd.f32 %v344_v61, %v343_v59 }
 0x2a1   :  { %v338_v1 = vadd.f32 %v337_v62, %v336_v60  ;;  %v346_v2 = vrot.slane %v345_v63, 1 }
 0x2a3   :  { %v347_v3 = vadd.f32 %v346_v2, %v345_v63  ;;  %v348_v5 = vmul.f32 0.0625, %v338_v1 }
 0x2a5   :  { %v349_v6 = vmul.f32 0.0625, %v347_v3  ;;  %v350_v7 = vmul.f32 %v348_v5, %v348_v5  ;;  %v353_v8 = vsub.f32 %v324_v46, %v348_v5  ;;  %v354_v9 = vsub.f32 %v327_v49, %v348_v5 }
 0x2a7   :  { %v351_v10 = vsub.f32 %v349_v6, %v350_v7 }
 0x2a9   :  { %v352_v11 = vmax.f32 %v351_v10, 0.0 }
 0x2ab   :  { %v355_v12 = vadd.f32 1e-05, %v352_v11 }
 0x2ad   :  { %2057 = vrsqrt.f32 %v355_v12 }
 0x2b7   :  { %v2058_v13 = vpop.eup %2057 }
 0x2b8   :  { %v357_v15 = vmul.f32 %v2058_v13, %v353_v8  ;;  %v358_v16 = vmul.f32 %v2058_v13, %v354_v9 }
 0x2ba   :  { %v366_v18 = vmul.f32 %v1507_v14, %v357_v15  ;;  %v367_v19 = vmul.f32 %v1507_v14, %v358_v16 }
 0x2bc   :  { %v375_v20 = vadd.f32 %v1508_v17, %v366_v18  ;;  %v376_v21 = vadd.f32 %v1508_v17, %v367_v19 }
 0x2be   :  { %v377_v22 = vmax.f32 %v375_v20, 0.0  ;;  %v378_v23 = vmax.f32 %v376_v21, 0.0 }
 0x2c0   :  { %v381_v24 = vpack.c.bf16 %v378_v23, %v377_v22 }
 0x2c2   :  { %1825 = vmatpush3.bf16.msra.mxu1 %v381_v24 }
 0x2c3   :  { %1850 = vmatprep.subr.bf16.mxu1 %v2065_v0 }
 0x2c5   :  { %1827 = vmatmul.mubr.msk.bf16.vlgmr.msra.gmra.mrb[8].mxu1 %vm55_vm1, %v2137_v4 }
 0x2c6   :  { %1866 = vmatprep.mubr.msk.bf16.mxu1 %vm2066_vm0, %v2065_v0  ;;  %1851 = vmatpush3.bf16.msra.mxu1 %v2009_v27 }
 0x2c7   :  { %1852 = vmatprep.subr.bf16.mxu1 %v2065_v0 }
 0x2ca   :  { %1853 = vmatpush3.bf16.msra.mxu1 %v2010_v28 }
 0x2cb   :  { %1854 = vmatprep.subr.bf16.mxu1 %v2065_v0 }
 0x2ce   :  { %1855 = vmatpush3.bf16.msra.mxu1 %v2011_v29 }
 0x2cf   :  { %1856 = vmatprep.subr.bf16.mxu1 %v2065_v0 }
 0x2d2   :  { %1857 = vmatpush3.bf16.msra.mxu1 %v2012_v30 }
 0x2d3   :  { %1858 = vmatprep.subr.bf16.mxu1 %v2065_v0 }
 0x2d6   :  { %1859 = vmatpush3.bf16.msra.mxu1 %v2013_v31 }
 0x2d7   :  { %1860 = vmatprep.subr.bf16.mxu1 %v2065_v0 }
 0x2da   :  { %1861 = vmatpush3.bf16.msra.mxu1 %v2014_v32 }
 0x2db   :  { %1862 = vmatprep.subr.bf16.mxu1 %v2065_v0 }
 0x2de   :  { %1863 = vmatpush3.bf16.msra.mxu1 %v2015_v40  ;;  %v2024_v40 = vld [vmem:[%s2518_s2 + $0xb8] sm:$0xff]  }
 0x2df   :  { %1864 = vmatprep.subr.bf16.mxu1 %v2065_v0 }
 0x2e2   :  { %1865 = vmatpush3.bf16.msra.mxu1 %v2016_v41  ;;  %v2025_v41 = vld [vmem:[%s2519_s4 + $0x80] sm:$0xff]  }
 0x2e3   :  { %1870 = vmatprep.subr.bf16.mxu1 %v2065_v0 }
 0x398   :  { %v416_v33 = vpop.f32.mrb[8].mxu1 }
 0x399   :  { %v1828_v34 = vpop.f32.mrb[9].mxu1  ;;  %v423_v36 = vadd.f32 %v416_v33, %v377_v22  ;;  %v1563_v22 = vld [vmem:[%s2522_s6 + $0x1] ss:$0 sm:$0xff] }
 0x39a   :  { %v419_v35 = vpop.f32.mrb[10].mxu1  ;;  %v2017_v33 = vld [vmem:[%s2518_s2 + $0x80] sm:$0xff]   ;;  %v2018_v34 = vld [vmem:[%s2518_s2 + $0x88] sm:$0xff]  }
 0x39b   :  { %v424_v37 = vadd.f32 %v419_v35, %v378_v23  ;;  %v1829_v38 = vpop.f32.mrb[11].mxu1  ;;  %v2019_v35 = vld [vmem:[%s2518_s2 + $0x90] sm:$0xff]  }
 0x39c   :  { %v2022_v38 = vld [vmem:[%s2518_s2 + $0xa8] sm:$0xff]  }
 0x39d   :  { %v425_v39 = vpack.c.bf16 %v424_v37, %v423_v36  ;;  %v2020_v36 = vld [vmem:[%s2518_s2 + $0x98] sm:$0xff]   ;;  %v2021_v37 = vld [vmem:[%s2518_s2 + $0xa0] sm:$0xff]  }
 0x39f   :  { %1847 = vmatmul.mubr.bf16.vlgmr.msra.gmra.mrb[4].mxu0 %v425_v39  ;;  %v2023_v39 = vld [vmem:[%s2518_s2 + $0xb0] sm:$0xff]  }
 0x3a0   :  { %1912 = vmatprep.mubr.msk.bf16.mxu0 %vm2066_vm0, %v2065_v0  ;;  %1897 = vmatpush3.bf16.msra.mxu0 %v2025_v41 }
 0x3a1   :  { %1898 = vmatprep.subr.bf16.mxu0 %v2065_v0 }
 0x472   :  { %v533_v43 = vpop.f32.mrb[4].mxu0 }
 0x473   :  { %v534_v44 = vadd.f32 %v1527_v42, %v533_v43  ;;  %v1848_v45 = vpop.f32.mrb[5].mxu0  ;;  %v2027_v43 = vld [vmem:[%s2519_s4 + $0x90] sm:$0xff]  }
 0x474   :  { %v536_v46 = vpop.f32.mrb[6].mxu0  ;;  %v2029_v45 = vld [vmem:[%s2519_s4 + $0xa0] sm:$0xff]  }
 0x475   :  { %v537_v47 = vadd.f32 %v1527_v42, %v536_v46  ;;  %v1849_v48 = vpop.f32.mrb[7].mxu0  ;;  %v540_v49 = vmax.f32 %v534_v44, 0.0  ;;  %v2026_v42 = vld [vmem:[%s2519_s4 + $0x88] sm:$0xff]   ;;  %v2028_v44 = vld [vmem:[%s2519_s4 + $0x98] sm:$0xff]  }
 0x476   :  { %1899 = vmatpush3.bf16.msra.mxu0 %v2026_v42  ;;  %v2030_v46 = vld [vmem:[%s2519_s4 + $0xa8] sm:$0xff]   ;;  %v1620_v42 = vld [vmem:[%s2522_s6 + $0x2] ss:$0 sm:$0xff] }
 0x477   :  { %v541_v50 = vmax.f32 %v537_v47, 0.0  ;;  %1900 = vmatprep.subr.bf16.mxu0 %v2065_v0 }
 0x479   :  { %v542_v51 = vpack.c.bf16 %v541_v50, %v540_v49 }
 0x47a   :  { %1901 = vmatpush3.bf16.msra.mxu0 %v2027_v43 }
 0x47b   :  { %1867 = vmatmul.mubr.bf16.vlgmr.msra.gmra.mrb[12].mxu1 %v542_v51  ;;  %1902 = vmatprep.subr.bf16.mxu0 %v2065_v0 }
 0x47c   :  { %1872 = vmatprep.mubr.msk.bf16.mxu1 %vm2066_vm0, %v2065_v0 }
 0x47e   :  { %1903 = vmatpush3.bf16.msra.mxu0 %v2028_v44 }
 0x47f   :  { %1904 = vmatprep.subr.bf16.mxu0 %v2065_v0 }
 0x482   :  { %1905 = vmatpush3.bf16.msra.mxu0 %v2029_v45  ;;  %v1622_v45 = vld [vmem:[%s2523_s7 + $0x2] ss:$0 sm:$0xff] }
 0x483   :  { %1906 = vmatprep.subr.bf16.mxu0 %v2065_v0 }
 0x486   :  { %1907 = vmatpush3.bf16.msra.mxu0 %v2030_v46 }
 0x487   :  { %1908 = vmatprep.subr.bf16.mxu0 %v2065_v0 }
 0x54e   :  { %v650_v53 = vpop.f32.mrb[12].mxu1 }
 0x54f   :  { %v651_v54 = vadd.f32 %v1553_v52, %v650_v53  ;;  %v1868_v55 = vpop.f32.mrb[13].mxu1 }
 0x550   :  { %v653_v56 = vpop.f32.mrb[14].mxu1  ;;  %v2032_v55 = vld [vmem:[%s2519_s4 + $0xb8] sm:$0xff]  }
 0x551   :  { %v654_v57 = vadd.f32 %v1553_v52, %v653_v56  ;;  %v1869_v58 = vpop.f32.mrb[15].mxu1  ;;  %v666_v59 = vmul.f32 %v651_v54, %v651_v54  ;;  %v1584_v56 = vld [vmem:[%s2520_s3 + $0x2] ss:$0 sm:$0xff] }
 0x553   :  { %v659_v60 = vadd.f32 %v654_v57, %v651_v54  ;;  %v667_v61 = vmul.f32 %v654_v57, %v654_v57 }
 0x555   :  { %v660_v62 = vrot.slane %v659_v60, 4  ;;  %v668_v63 = vadd.f32 %v667_v61, %v666_v59 }
 0x557   :  { %v661_v1 = vadd.f32 %v660_v62, %v659_v60  ;;  %v669_v2 = vrot.slane %v668_v63, 4 }
 0x559   :  { %v662_v3 = vrot.slane %v661_v1, 2  ;;  %v670_v5 = vadd.f32 %v669_v2, %v668_v63 }
 0x55b   :  { %v663_v6 = vadd.f32 %v662_v3, %v661_v1  ;;  %v671_v7 = vrot.slane %v670_v5, 2  ;;  %v2033_v3 = vld [vmem:[%s2518_s2 + $0xc0] sm:$0xff]  }
 0x55d   :  { %v664_v8 = vrot.slane %v663_v6, 1  ;;  %v672_v9 = vadd.f32 %v671_v7, %v670_v5  ;;  %v2034_v5 = vld [vmem:[%s2518_s2 + $0xc8] sm:$0xff]   ;;  %v2036_v7 = vld [vmem:[%s2518_s2 + $0xd8] sm:$0xff]  }
 0x55f   :  { %v665_v10 = vadd.f32 %v664_v8, %v663_v6  ;;  %v673_v11 = vrot.slane %v672_v9, 1  ;;  %v2035_v6 = vld [vmem:[%s2518_s2 + $0xd0] sm:$0xff]   ;;  %v2037_v8 = vld [vmem:[%s2518_s2 + $0xe0] sm:$0xff]  }
 0x561   :  { %v674_v12 = vadd.f32 %v673_v11, %v672_v9  ;;  %v675_v13 = vmul.f32 0.0625, %v665_v10  ;;  %v2038_v9 = vld [vmem:[%s2518_s2 + $0xe8] sm:$0xff]   ;;  %v1610_v10 = vld [vmem:[%s2521_s5 + $0x2] ss:$0 sm:$0xff] }
 0x563   :  { %v676_v14 = vmul.f32 0.0625, %v674_v12  ;;  %v677_v15 = vmul.f32 %v675_v13, %v675_v13  ;;  %v680_v16 = vsub.f32 %v651_v54, %v675_v13  ;;  %v681_v17 = vsub.f32 %v654_v57, %v675_v13  ;;  %v2031_v54 = vld [vmem:[%s2519_s4 + $0xb0] sm:$0xff]  }
 0x564   :  { %1909 = vmatpush3.bf16.msra.mxu0 %v2031_v54  ;;  %v2040_v54 = vld [vmem:[%s2518_s2 + $0xf8] sm:$0xff]  }
 0x565   :  { %v678_v18 = vsub.f32 %v676_v14, %v677_v15  ;;  %1910 = vmatprep.subr.bf16.mxu0 %v2065_v0 }
 0x567   :  { %v679_v19 = vmax.f32 %v678_v18, 0.0 }
 0x568   :  { %1911 = vmatpush3.bf16.msra.mxu0 %v2032_v55  ;;  %v2042_v55 = vld [vmem:[%s2519_s4 + $0xc8] sm:$0xff]  }
 0x569   :  { %v682_v20 = vadd.f32 1e-05, %v679_v19  ;;  %1922 = vmatprep.subr.bf16.mxu0 %v2065_v0 }
 0x56b   :  { %2059 = vrsqrt.f32 %v682_v20 }
 0x575   :  { %v2060_v21 = vpop.eup %2059 }
 0x576   :  { %v684_v23 = vmul.f32 %v2060_v21, %v680_v16  ;;  %v685_v24 = vmul.f32 %v2060_v21, %v681_v17 }
 0x578   :  { %v694_v26 = vmul.f32 %v1563_v22, %v684_v23  ;;  %v695_v27 = vmul.f32 %v1563_v22, %v685_v24 }
 0x57a   :  { %v704_v28 = vadd.f32 %v1565_v25, %v694_v26  ;;  %v705_v29 = vadd.f32 %v1565_v25, %v695_v27 }
 0x57c   :  { %v706_v30 = vmax.f32 %v704_v28, 0.0  ;;  %v707_v31 = vmax.f32 %v705_v29, 0.0 }
 0x57e   :  { %v710_v32 = vpack.c.bf16 %v707_v31, %v706_v30 }
 0x580   :  { %1871 = vmatpush3.bf16.msra.mxu1 %v710_v32 }
 0x581   :  { %1876 = vmatprep.subr.bf16.mxu1 %v2065_v0 }
 0x583   :  { %1873 = vmatmul.mubr.msk.bf16.vlgmr.msra.gmra.mrb[16].mxu1 %vm55_vm1, %v2137_v4 }
 0x584   :  { %1877 = vmatpush3.bf16.msra.mxu1 %v2017_v33  ;;  %1892 = vmatprep.mubr.msk.bf16.mxu1 %vm2066_vm0, %v2065_v0 }
 0x585   :  { %1878 = vmatprep.subr.bf16.mxu1 %v2065_v0 }
 0x588   :  { %1879 = vmatpush3.bf16.msra.mxu1 %v2018_v34 }
 0x589   :  { %1880 = vmatprep.subr.bf16.mxu1 %v2065_v0 }
 0x58c   :  { %1881 = vmatpush3.bf16.msra.mxu1 %v2019_v35 }
 0x58d   :  { %1882 = vmatprep.subr.bf16.mxu1 %v2065_v0 }
 0x590   :  { %1883 = vmatpush3.bf16.msra.mxu1 %v2020_v36 }
 0x591   :  { %1884 = vmatprep.subr.bf16.mxu1 %v2065_v0 }
 0x594   :  { %1885 = vmatpush3.bf16.msra.mxu1 %v2021_v37 }
 0x595   :  { %1886 = vmatprep.subr.bf16.mxu1 %v2065_v0 }
 0x598   :  { %1887 = vmatpush3.bf16.msra.mxu1 %v2022_v38 }
 0x599   :  { %1888 = vmatprep.subr.bf16.mxu1 %v2065_v0 }
 0x59c   :  { %1889 = vmatpush3.bf16.msra.mxu1 %v2023_v39 }
 0x59d   :  { %1890 = vmatprep.subr.bf16.mxu1 %v2065_v0 }
 0x5a0   :  { %1891 = vmatpush3.bf16.msra.mxu1 %v2024_v40 }
 0x5a1   :  { %1916 = vmatprep.subr.bf16.mxu1 %v2065_v0 }
 0x656   :  { %v745_v47 = vpop.f32.mrb[16].mxu1 }
 0x657   :  { %v1874_v48 = vpop.f32.mrb[17].mxu1  ;;  %v752_v50 = vadd.f32 %v745_v47, %v706_v30 }
 0x658   :  { %v748_v49 = vpop.f32.mrb[18].mxu1 }
 0x659   :  { %v753_v51 = vadd.f32 %v748_v49, %v707_v31  ;;  %v1875_v52 = vpop.f32.mrb[19].mxu1 }
 0x65b   :  { %v754_v53 = vpack.c.bf16 %v753_v51, %v752_v50 }
 0x65d   :  { %1893 = vmatmul.mubr.bf16.vlgmr.msra.gmra.mrb[20].mxu1 %v754_v53  ;;  %v2039_v53 = vld [vmem:[%s2518_s2 + $0xf0] sm:$0xff]  }
 0x65e   :  { %1918 = vmatprep.mubr.msk.bf16.mxu1 %vm2066_vm0, %v2065_v0 }
 0x730   :  { %v862_v57 = vpop.f32.mrb[20].mxu1 }
 0x731   :  { %v863_v58 = vadd.f32 %v1584_v56, %v862_v57  ;;  %v1894_v59 = vpop.f32.mrb[21].mxu1  ;;  %v2044_v57 = vld [vmem:[%s2519_s4 + $0xd8] sm:$0xff]  }
 0x732   :  { %v865_v60 = vpop.f32.mrb[22].mxu1  ;;  %v2046_v59 = vld [vmem:[%s2519_s4 + $0xe8] sm:$0xff]  }
 0x733   :  { %v866_v61 = vadd.f32 %v1584_v56, %v865_v60  ;;  %v1895_v62 = vpop.f32.mrb[23].mxu1  ;;  %v869_v63 = vmax.f32 %v863_v58, 0.0  ;;  %v2043_v56 = vld [vmem:[%s2519_s4 + $0xd0] sm:$0xff]   ;;  %v2045_v58 = vld [vmem:[%s2519_s4 + $0xe0] sm:$0xff]  }
 0x735   :  { %v870_v1 = vmax.f32 %v866_v61, 0.0 }
 0x737   :  { %v871_v2 = vpack.c.bf16 %v870_v1, %v869_v63 }
 0x739   :  { %1913 = vmatmul.mubr.bf16.vlgmr.msra.gmra.mrb[8].mxu0 %v871_v2 }
 0x73a   :  { %1938 = vmatprep.mubr.msk.bf16.mxu0 %vm2066_vm0, %v2065_v0  ;;  %1923 = vmatpush3.bf16.msra.mxu0 %v2033_v3 }
 0x73b   :  { %1924 = vmatprep.subr.bf16.mxu0 %v2065_v0 }
 0x73e   :  { %1925 = vmatpush3.bf16.msra.mxu0 %v2034_v5  ;;  %v2047_v5 = vld [vmem:[%s2519_s4 + $0xf0] sm:$0xff]  }
 0x73f   :  { %1926 = vmatprep.subr.bf16.mxu0 %v2065_v0 }
 0x742   :  { %1927 = vmatpush3.bf16.msra.mxu0 %v2035_v6  ;;  %v2048_v6 = vld [vmem:[%s2519_s4 + $0xf8] sm:$0xff]  }
 0x743   :  { %1928 = vmatprep.subr.bf16.mxu0 %v2065_v0 }
 0x746   :  { %1929 = vmatpush3.bf16.msra.mxu0 %v2036_v7  ;;  %v1641_v7 = vld [vmem:[%s2520_s3 + $0x3] ss:$0 sm:$0xff] }
 0x747   :  { %1930 = vmatprep.subr.bf16.mxu0 %v2065_v0 }
 0x74a   :  { %1931 = vmatpush3.bf16.msra.mxu0 %v2037_v8 }
 0x74b   :  { %1932 = vmatprep.subr.bf16.mxu0 %v2065_v0 }
 0x74e   :  { %1933 = vmatpush3.bf16.msra.mxu0 %v2038_v9 }
 0x74f   :  { %1934 = vmatprep.subr.bf16.mxu0 %v2065_v0 }
 0x752   :  { %1935 = vmatpush3.bf16.msra.mxu0 %v2039_v53 }
 0x753   :  { %1936 = vmatprep.subr.bf16.mxu0 %v2065_v0 }
 0x756   :  { %1937 = vmatpush3.bf16.msra.mxu0 %v2040_v54 }
 0x757   :  { %1962 = vmatprep.subr.bf16.mxu0 %v2065_v0 }
 0x80c   :  { %v979_v11 = vpop.f32.mrb[8].mxu0 }
 0x80d   :  { %v980_v12 = vadd.f32 %v1610_v10, %v979_v11  ;;  %v1914_v13 = vpop.f32.mrb[9].mxu0 }
 0x80e   :  { %v982_v14 = vpop.f32.mrb[10].mxu0 }
 0x80f   :  { %v983_v15 = vadd.f32 %v1610_v10, %v982_v14  ;;  %v1915_v16 = vpop.f32.mrb[11].mxu0  ;;  %v995_v17 = vmul.f32 %v980_v12, %v980_v12 }
 0x811   :  { %v988_v18 = vadd.f32 %v983_v15, %v980_v12  ;;  %v996_v19 = vmul.f32 %v983_v15, %v983_v15 }
 0x813   :  { %v989_v20 = vrot.slane %v988_v18, 4  ;;  %v997_v21 = vadd.f32 %v996_v19, %v995_v17  ;;  %v2049_v17 = vld [vmem:[%s2524_s8] sm:$0xff]   ;;  %v2051_v19 = vld [vmem:[%s2524_s8 + $0x10] sm:$0xff]  }
 0x815   :  { %v990_v22 = vadd.f32 %v989_v20, %v988_v18  ;;  %v998_v23 = vrot.slane %v997_v21, 4  ;;  %v2050_v18 = vld [vmem:[%s2524_s8 + $0x8] sm:$0xff]   ;;  %v2052_v20 = vld [vmem:[%s2524_s8 + $0x18] sm:$0xff]  }
 0x817   :  { %v991_v24 = vrot.slane %v990_v22, 2  ;;  %v999_v25 = vadd.f32 %v998_v23, %v997_v21  ;;  %v2053_v21 = vld [vmem:[%s2524_s8 + $0x20] sm:$0xff]   ;;  %v2055_v23 = vld [vmem:[%s2524_s8 + $0x30] sm:$0xff]  }
 0x819   :  { %v992_v26 = vadd.f32 %v991_v24, %v990_v22  ;;  %v1000_v27 = vrot.slane %v999_v25, 2  ;;  %v2054_v22 = vld [vmem:[%s2524_s8 + $0x28] sm:$0xff]   ;;  %v2056_v24 = vld [vmem:[%s2524_s8 + $0x38] sm:$0xff]  }
 0x81b   :  { %v993_v28 = vrot.slane %v992_v26, 1  ;;  %v1001_v29 = vadd.f32 %v1000_v27, %v999_v25  ;;  %v1667_v25 = vld [vmem:[%s2521_s5 + $0x3] ss:$0 sm:$0xff] }
 0x81d   :  { %v994_v30 = vadd.f32 %v993_v28, %v992_v26  ;;  %v1002_v31 = vrot.slane %v1001_v29, 1 }
 0x81f   :  { %v1003_v32 = vadd.f32 %v1002_v31, %v1001_v29  ;;  %v1004_v33 = vmul.f32 0.0625, %v994_v30 }
 0x821   :  { %v1005_v34 = vmul.f32 0.0625, %v1003_v32  ;;  %v1006_v35 = vmul.f32 %v1004_v33, %v1004_v33  ;;  %v1009_v36 = vsub.f32 %v980_v12, %v1004_v33  ;;  %v1010_v37 = vsub.f32 %v983_v15, %v1004_v33 }
 0x823   :  { %v1007_v38 = vsub.f32 %v1005_v34, %v1006_v35 }
 0x825   :  { %v1008_v39 = vmax.f32 %v1007_v38, 0.0 }
 0x827   :  { %v1011_v40 = vadd.f32 1e-05, %v1008_v39 }
 0x829   :  { %2061 = vrsqrt.f32 %v1011_v40 }
 0x833   :  { %v2062_v41 = vpop.eup %2061 }
 0x834   :  { %v1013_v43 = vmul.f32 %v2062_v41, %v1009_v36  ;;  %v1014_v44 = vmul.f32 %v2062_v41, %v1010_v37 }
 0x836   :  { %v1023_v46 = vmul.f32 %v1620_v42, %v1013_v43  ;;  %v1024_v47 = vmul.f32 %v1620_v42, %v1014_v44 }
 0x838   :  { %v1033_v48 = vadd.f32 %v1622_v45, %v1023_v46  ;;  %v1034_v49 = vadd.f32 %v1622_v45, %v1024_v47 }
 0x83a   :  { %v1035_v50 = vmax.f32 %v1033_v48, 0.0  ;;  %v1036_v51 = vmax.f32 %v1034_v49, 0.0 }
 0x83c   :  { %v1039_v52 = vpack.c.bf16 %v1036_v51, %v1035_v50 }
 0x83e   :  { %1917 = vmatpush3.bf16.msra.mxu1 %v1039_v52 }
 0x83f   :  { %1942 = vmatprep.subr.bf16.mxu1 %v2065_v0 }
 0x841   :  { %1919 = vmatmul.mubr.msk.bf16.vlgmr.msra.gmra.mrb[24].mxu1 %vm55_vm1, %v2137_v4  ;;  %v2041_v4 = vld [vmem:[%s2519_s4 + $0xc0] sm:$0xff]  }
 0x842   :  { %1958 = vmatprep.mubr.msk.bf16.mxu1 %vm2066_vm0, %v2065_v0  ;;  %1943 = vmatpush3.bf16.msra.mxu1 %v2041_v4 }
 0x843   :  { %1944 = vmatprep.subr.bf16.mxu1 %v2065_v0 }
 0x846   :  { %1945 = vmatpush3.bf16.msra.mxu1 %v2042_v55  ;;  %v1677_v55 = vld [vmem:[%s2522_s6 + $0x3] ss:$0 sm:$0xff] }
 0x847   :  { %1946 = vmatprep.subr.bf16.mxu1 %v2065_v0 }
 0x84a   :  { %1947 = vmatpush3.bf16.msra.mxu1 %v2043_v56 }
 0x84b   :  { %1948 = vmatprep.subr.bf16.mxu1 %v2065_v0 }
 0x84e   :  { %1949 = vmatpush3.bf16.msra.mxu1 %v2044_v57 }
 0x84f   :  { %1950 = vmatprep.subr.bf16.mxu1 %v2065_v0 }
 0x852   :  { %1951 = vmatpush3.bf16.msra.mxu1 %v2045_v58  ;;  %v1679_v58 = vld [vmem:[%s2523_s7 + $0x3] ss:$0 sm:$0xff] }
 0x853   :  { %1952 = vmatprep.subr.bf16.mxu1 %v2065_v0 }
 0x856   :  { %1953 = vmatpush3.bf16.msra.mxu1 %v2046_v59 }
 0x857   :  { %1954 = vmatprep.subr.bf16.mxu1 %v2065_v0 }
 0x85a   :  { %1955 = vmatpush3.bf16.msra.mxu1 %v2047_v5 }
 0x85b   :  { %1956 = vmatprep.subr.bf16.mxu1 %v2065_v0 }
 0x85e   :  { %1957 = vmatpush3.bf16.msra.mxu1 %v2048_v6 }
 0x914   :  { %v1074_v60 = vpop.f32.mrb[24].mxu1 }
 0x915   :  { %v1920_v61 = vpop.f32.mrb[25].mxu1  ;;  %v1081_v63 = vadd.f32 %v1074_v60, %v1035_v50 }
 0x916   :  { %v1077_v62 = vpop.f32.mrb[26].mxu1 }
 0x917   :  { %v1082_v1 = vadd.f32 %v1077_v62, %v1036_v51  ;;  %v1921_v2 = vpop.f32.mrb[27].mxu1 }
 0x919   :  { %v1083_v3 = vpack.c.bf16 %v1082_v1, %v1081_v63 }
 0x91b   :  { %1939 = vmatmul.mubr.bf16.vlgmr.msra.gmra.mrb[12].mxu0 %v1083_v3  ;;  %v1680_v3 = vld [vmem:[%s2525_s9] ss:$0 sm:$0xff] }
 0x91c   :  { %1978 = vmatprep.mubr.msk.bf16.mxu0 %vm2066_vm0, %v2065_v0  ;;  %1963 = vmatpush3.bf16.msra.mxu0 %v2049_v17 }
 0x91d   :  { %1964 = vmatprep.subr.bf16.mxu0 %v2065_v0 }
 0x920   :  { %1965 = vmatpush3.bf16.msra.mxu0 %v2050_v18 }
 0x921   :  { %1966 = vmatprep.subr.bf16.mxu0 %v2065_v0 }
 0x924   :  { %1967 = vmatpush3.bf16.msra.mxu0 %v2051_v19 }
 0x925   :  { %1968 = vmatprep.subr.bf16.mxu0 %v2065_v0 }
 0x928   :  { %1969 = vmatpush3.bf16.msra.mxu0 %v2052_v20 }
 0x929   :  { %1970 = vmatprep.subr.bf16.mxu0 %v2065_v0 }
 0x92c   :  { %1971 = vmatpush3.bf16.msra.mxu0 %v2053_v21 }
 0x92d   :  { %1972 = vmatprep.subr.bf16.mxu0 %v2065_v0 }
 0x930   :  { %1973 = vmatpush3.bf16.msra.mxu0 %v2054_v22 }
 0x931   :  { %1974 = vmatprep.subr.bf16.mxu0 %v2065_v0 }
 0x934   :  { %1975 = vmatpush3.bf16.msra.mxu0 %v2055_v23 }
 0x935   :  { %1976 = vmatprep.subr.bf16.mxu0 %v2065_v0 }
 0x938   :  { %1977 = vmatpush3.bf16.msra.mxu0 %v2056_v24 }
 0x9ee   :  { %v1191_v8 = vpop.f32.mrb[12].mxu0 }
 0x9ef   :  { %v1192_v9 = vadd.f32 %v1641_v7, %v1191_v8  ;;  %v1940_v10 = vpop.f32.mrb[13].mxu0 }
 0x9f0   :  { %v1194_v11 = vpop.f32.mrb[14].mxu0 }
 0x9f1   :  { %v1195_v12 = vadd.f32 %v1641_v7, %v1194_v11  ;;  %v1941_v13 = vpop.f32.mrb[15].mxu0  ;;  %v1198_v14 = vmax.f32 %v1192_v9, 0.0 }
 0x9f3   :  { %v1199_v15 = vmax.f32 %v1195_v12, 0.0 }
 0x9f5   :  { %v1200_v16 = vpack.c.bf16 %v1199_v15, %v1198_v14 }
 0x9f7   :  { %1959 = vmatmul.mubr.bf16.vlgmr.msra.gmra.mrb[28].mxu1 %v1200_v16 }
 0xaca   :  { %v1308_v26 = vpop.f32.mrb[28].mxu1 }
 0xacb   :  { %v1309_v27 = vadd.f32 %v1667_v25, %v1308_v26  ;;  %v1960_v28 = vpop.f32.mrb[29].mxu1 }
 0xacc   :  { %v1311_v29 = vpop.f32.mrb[30].mxu1 }
 0xacd   :  { %v1312_v30 = vadd.f32 %v1667_v25, %v1311_v29  ;;  %v1961_v31 = vpop.f32.mrb[31].mxu1  ;;  %v1324_v32 = vmul.f32 %v1309_v27, %v1309_v27 }
 0xacf   :  { %v1317_v33 = vadd.f32 %v1312_v30, %v1309_v27  ;;  %v1325_v34 = vmul.f32 %v1312_v30, %v1312_v30 }
 0xad1   :  { %v1318_v35 = vrot.slane %v1317_v33, 4  ;;  %v1326_v36 = vadd.f32 %v1325_v34, %v1324_v32 }
 0xad3   :  { %v1319_v37 = vadd.f32 %v1318_v35, %v1317_v33  ;;  %v1327_v38 = vrot.slane %v1326_v36, 4 }
 0xad5   :  { %v1320_v39 = vrot.slane %v1319_v37, 2  ;;  %v1328_v0 = vadd.f32 %v1327_v38, %v1326_v36 }
 0xad7   :  { %v1321_v40 = vadd.f32 %v1320_v39, %v1319_v37  ;;  %v1329_v41 = vrot.slane %v1328_v0, 2 }
 0xad9   :  { %v1322_v42 = vrot.slane %v1321_v40, 1  ;;  %v1330_v43 = vadd.f32 %v1329_v41, %v1328_v0 }
 0xadb   :  { %v1323_v44 = vadd.f32 %v1322_v42, %v1321_v40  ;;  %v1331_v45 = vrot.slane %v1330_v43, 1 }
 0xadd   :  { %v1332_v46 = vadd.f32 %v1331_v45, %v1330_v43  ;;  %v1333_v47 = vmul.f32 0.0625, %v1323_v44 }
 0xadf   :  { %v1334_v48 = vmul.f32 0.0625, %v1332_v46  ;;  %v1335_v49 = vmul.f32 %v1333_v47, %v1333_v47  ;;  %v1338_v50 = vsub.f32 %v1309_v27, %v1333_v47  ;;  %v1339_v51 = vsub.f32 %v1312_v30, %v1333_v47 }
 0xae1   :  { %v1336_v52 = vsub.f32 %v1334_v48, %v1335_v49 }
 0xae3   :  { %v1337_v53 = vmax.f32 %v1336_v52, 0.0 }
 0xae5   :  { %v1340_v54 = vadd.f32 1e-05, %v1337_v53 }
 0xae7   :  { %2063 = vrsqrt.f32 %v1340_v54 }
 0xaf1   :  { %v2064_v4 = vpop.eup %2063 }
 0xaf2   :  { %v1342_v56 = vmul.f32 %v2064_v4, %v1338_v50  ;;  %v1343_v57 = vmul.f32 %v2064_v4, %v1339_v51 }
 0xaf4   :  { %v1352_v59 = vmul.f32 %v1677_v55, %v1342_v56  ;;  %v1353_v60 = vmul.f32 %v1677_v55, %v1343_v57 }
 0xaf6   :  { %v1362_v61 = vadd.f32 %v1679_v58, %v1352_v59  ;;  %v1363_v62 = vadd.f32 %v1679_v58, %v1353_v60 }
 0xaf8   :  { %v1364_v63 = vmax.f32 %v1362_v61, 0.0  ;;  %v1365_v1 = vmax.f32 %v1363_v62, 0.0 }
 0xafa   :  { %v1368_v2 = vpack.c.bf16 %v1365_v1, %v1364_v63 }
 0xafc   :  { %1979 = vmatmul.mubr.bf16.vlgmr.msra.gmra.mrb[16].mxu0 %v1368_v2 }
 0xbcf   :  { %v1474_v5 = vpop.f32.mrb[16].mxu0 }
 0xbd0   :  { %v1475_v6 = vadd.f32 %v1680_v3, %v1474_v5  ;;  %v1980_v7 = vpop.f32.mrb[17].mxu0 }
 0xbd1   :  { %v1477_v8 = vpop.f32.mrb[18].mxu0 }
 0xbd2   :  { %1481 = vst [vmem:[%s2526_s10] sm:$0xff] %v1475_v6  ;;  %v1478_v9 = vadd.f32 %v1680_v3, %v1477_v8  ;;  %v1981_v10 = vpop.f32.mrb[19].mxu0 }
 0xbd4   :  { %1482 = vst [vmem:[%s2526_s10 + $0x8] sm:$0xff] %v1478_v9 }

</bundles_post_ra>
